<compile_context>
chip_gen: v7x
topology: tpu7x:2x2x1
jax: 0.10.0
libtpu: 0.0.40
codegen_flags: <defaults>
</compile_context>

<pallas_src>
import functools

import numpy as np
import jax
import jax.numpy as jnp
from jax import lax
from jax.experimental import pallas as pl
from jax.experimental.pallas import tpu as pltpu


def _round_up(a, b):
    return (a + b - 1) // b * b


# --------------------------------------------------------------------------------------
# Phase 1: conv as kh*kw shifted matmuls + per-channel sum / sum-of-squares accumulation
# --------------------------------------------------------------------------------------
def _conv_stats_kernel(x_ref, w_ref, mask_ref, conv_ref, stats_ref, *, kh, kw, Wp):
    # x_ref    : (1, C, Ppad)     bf16  padded image, spatial flattened row-major (lanes)
    # w_ref    : (kh*kw, TO, C)   bf16  per-tap weight matrices
    # mask_ref : (1, Q)           f32   1.0 at valid output columns, 0.0 elsewhere
    # conv_ref : (1, TO, Q)       f32   raw conv output over the padded column grid
    # stats_ref: (TO, 2)          f32   [sum, sum_sq] accumulated across the batch axis
    n = pl.program_id(1)
    TO = conv_ref.shape[1]
    Q = conv_ref.shape[2]

    # Load once; do the per-tap lane-offset slices in f32 layout (cheap, proven lowering
    # for unaligned lane shifts), feed the MXU in bf16.
    x = x_ref[0].astype(jnp.float32)                       # (C, Ppad)

    acc = jnp.zeros((TO, Q), jnp.float32)
    for t in range(kh * kw):                               # static, fully unrolled
        dy, dx = divmod(t, kw)
        shift = dy * Wp + dx
        xs = x[:, shift:shift + Q].astype(jnp.bfloat16)    # (C, Q)
        acc = acc + lax.dot_general(                       # (TO, Q), bf16 in / f32 acc
            w_ref[t], xs,
            (((1,), (0,)), ((), ())),
            preferred_element_type=jnp.float32)
    conv_ref[0] = acc

    # Per-channel partial sums over the *valid* output positions of this image.
    mask = mask_ref[...]                                   # (1, Q)
    ym = acc * mask
    s1 = jnp.sum(ym, axis=1, keepdims=True)                # (TO, 1)  XLU reduce
    s2 = jnp.sum(ym * acc, axis=1, keepdims=True)          # (TO, 1)
    partial = jnp.concatenate([s1, s2], axis=1)            # (TO, 2)  single store

    @pl.when(n == 0)
    def _():
        stats_ref[...] = partial

    @pl.when(n != 0)
    def _():
        stats_ref[...] += partial


# --------------------------------------------------------------------------------------
# Phase 2: folded BatchNorm affine + LeakyReLU(0.125), applied in place
# --------------------------------------------------------------------------------------
def _bn_leaky_kernel(conv_ref, stats_ref, gb_ref, out_ref, *, count, eps, slope):
    # conv_ref : (TN, TO, Q) f32, stats_ref/gb_ref : (TO, 2) f32, out_ref : (TN, TO, Q)
    st = stats_ref[...]
    inv_n = 1.0 / count
    mean = st[:, 0:1] * inv_n                              # (TO, 1)
    var = st[:, 1:2] * inv_n - mean * mean                 # biased var (PyTorch train BN)
    scale = gb_ref[:, 0:1] * lax.rsqrt(var + eps)          # rsqrt -> EUP slot
    shift = gb_ref[:, 1:2] - mean * scale
    y = conv_ref[...] * scale[None] + shift[None]          # folded epilogue: 2 VPU ops/el
    out_ref[...] = jnp.where(y > 0, y, slope * y)


# --------------------------------------------------------------------------------------
# Wrapper
# --------------------------------------------------------------------------------------
@functools.partial(jax.jit, static_argnames=("stride", "padding"))
def darknet_conv_bn_leaky(x, weight, bias, gamma, beta, *, stride=1, padding=1):
    """Forward of DarknetConv2D_BN_Leaky.

    x:      (N, C, H, W)   float32 (NCHW, like PyTorch)
    weight: (O, C, kh, kw) float32
    bias:   (O,)           float32 -- accepted but unused (exactly cancelled by BN mean)
    gamma, beta: (O,)      float32
    returns (N, O, Ho, Wo) float32
    """
    del bias  # mathematically a no-op under training-mode BatchNorm
    N, C, H, W = x.shape
    O, _, kh, kw = weight.shape
    Hp, Wp = H + 2 * padding, W + 2 * padding
    Ho = (Hp - kh) // stride + 1
    Wo = (Wp - kw) // stride + 1
    Hn = (Ho - 1) * stride + 1                      # rows of the stride-1 grid we need
    Q = _round_up(Hn * Wp, 128)                     # lane-dense column count per image
    max_shift = (kh - 1) * Wp + (kw - 1)
    Ppad = _round_up(Q + max_shift, 128)

    # Trace-time constant: validity mask over the Q columns (real output positions on
    # the stride grid; right/bottom apron and padding tail are 0).
    qs = np.arange(Q)
    hh, ww = qs // Wp, qs % Wp
    valid = ((hh % stride == 0) & (ww % stride == 0)
             & (hh <= (Ho - 1) * stride) & (ww <= (Wo - 1) * stride))
    mask = jnp.asarray(valid.astype(np.float32).reshape(1, Q))

    # Operand prep: x is already NCHW, so this is just pad + reshape + bf16 cast
    # (no transposes; chained Darknet blocks could keep this layout end-to-end).
    xp = jnp.pad(x, ((0, 0), (0, 0), (padding, padding), (padding, padding)))
    x_cols = xp.reshape(N, C, Hp * Wp)
    x_cols = jnp.pad(x_cols, ((0, 0), (0, 0), (0, Ppad - Hp * Wp))).astype(jnp.bfloat16)
    w_taps = jnp.transpose(weight, (2, 3, 0, 1)).reshape(kh * kw, O, C).astype(jnp.bfloat16)
    gb = jnp.stack([gamma, beta], axis=1).astype(jnp.float32)          # (O, 2)

    # Output-channel tiling (single tile at YOLO-tiny widths; 256-wide tiles for huge O).
    TO = O if (O <= 256 or O % 256 != 0) else 256
    num_oc = O // TO
    # Phase-2 batch tile: process the whole batch per step when the blocks are small.
    TN = N if (2 * N * TO * Q * 4) <= (8 << 20) else 1

    # VMEM limit sized to the live tiles (double buffers + accumulator), capped well
    # below the 64 MiB physical VMEM of a v7x TensorCore.
    blk1 = (C * Ppad * 2 + kh * kw * TO * C * 2 + Q * 4 + TO * Q * 4 + TO * 2 * 4)
    blk2 = 2 * TN * TO * Q * 4
    vmem_limit = int(min(max(4 * max(blk1, blk2), 16 << 20), 48 << 20))

    conv_cols, stats = pl.pallas_call(
        functools.partial(_conv_stats_kernel, kh=kh, kw=kw, Wp=Wp),
        grid=(num_oc, N),
        in_specs=[
            pl.BlockSpec((1, C, Ppad), lambda oc, n: (n, 0, 0)),
            pl.BlockSpec((kh * kw, TO, C), lambda oc, n: (0, oc, 0)),
            pl.BlockSpec((1, Q), lambda oc, n: (0, 0)),
        ],
        out_specs=[
            pl.BlockSpec((1, TO, Q), lambda oc, n: (n, oc, 0)),
            pl.BlockSpec((TO, 2), lambda oc, n: (oc, 0)),   # resident accumulator over n
        ],
        out_shape=[
            jax.ShapeDtypeStruct((N, O, Q), jnp.float32),
            jax.ShapeDtypeStruct((O, 2), jnp.float32),
        ],
        compiler_params=pltpu.CompilerParams(
            dimension_semantics=("parallel", "arbitrary"),
            vmem_limit_bytes=vmem_limit),
    )(x_cols, w_taps, mask)

    count = float(N * Ho * Wo)
    out_cols = pl.pallas_call(
        functools.partial(_bn_leaky_kernel, count=count, eps=1e-5, slope=0.125),
        grid=(num_oc, N // TN),
        in_specs=[
            pl.BlockSpec((TN, TO, Q), lambda oc, n: (n, oc, 0)),
            pl.BlockSpec((TO, 2), lambda oc, n: (oc, 0)),
            pl.BlockSpec((TO, 2), lambda oc, n: (oc, 0)),
        ],
        out_specs=pl.BlockSpec((TN, TO, Q), lambda oc, n: (n, oc, 0)),
        out_shape=jax.ShapeDtypeStruct((N, O, Q), jnp.float32),
        input_output_aliases={0: 0},                 # overwrite the conv buffer in place
        compiler_params=pltpu.CompilerParams(
            dimension_semantics=("parallel", "parallel"),
            vmem_limit_bytes=vmem_limit),
    )(conv_cols, stats, gb)

    # Extract the valid (strided) output positions and return NCHW.
    y = out_cols[:, :, :Hn * Wp].reshape(N, O, Hn, Wp)
    y = y[:, :, ::stride, :(Wo - 1) * stride + 1:stride]
    return y


# --------------------------------------------------------------------------------------
# Pure-JAX reference (Conv2d with bias + train-mode BN + LeakyReLU(0.125))
# --------------------------------------------------------------------------------------
def _reference(x, weight, bias, gamma, beta, *, stride=1, padding=1,
               operand_dtype=jnp.float32):
    xr = x.astype(operand_dtype).astype(jnp.float32)
    wr = weight.astype(operand_dtype).astype(jnp.float32)
    y = lax.conv_general_dilated(
        xr, wr, window_strides=(stride, stride),
        padding=((padding, padding), (padding, padding)),
        dimension_numbers=("NCHW", "OIHW", "NCHW"),
    ) + bias[None, :, None, None]
    mean = jnp.mean(y, axis=(0, 2, 3), keepdims=True)
    var = jnp.mean((y - mean) ** 2, axis=(0, 2, 3), keepdims=True)   # biased variance
    y = (y - mean) * lax.rsqrt(var + 1e-5)
    y = y * gamma[None, :, None, None] + beta[None, :, None, None]
    return jnp.where(y > 0, y, 0.125 * y)


if __name__ == "__main__":
    # DarknetConv2D_BN_Leaky(numIn=4, numOut=8, ksize=3, stride=1, padding=1)
    numIn, numOut, ksize, stride, padding = 4, 8, 3, 1, 1
    N, H, W = 2, 16, 16

    key = jax.random.PRNGKey(0)
    kx, kw_key, kb, kg, kbe = jax.random.split(key, 5)
    x = jax.random.normal(kx, (N, numIn, H, W), dtype=jnp.float32)
    weight = 0.1 * jax.random.normal(kw_key, (numOut, numIn, ksize, ksize), dtype=jnp.float32)
    bias = 0.05 * jax.random.normal(kb, (numOut,), dtype=jnp.float32)
    gamma = 1.0 + 0.1 * jax.random.normal(kg, (numOut,), dtype=jnp.float32)
    beta = 0.1 * jax.random.normal(kbe, (numOut,), dtype=jnp.float32)

    out = darknet_conv_bn_leaky(x, weight, bias, gamma, beta, stride=stride, padding=padding)
    out = jax.block_until_ready(out)
    assert out.shape == (N, numOut, H, W), out.shape

    # Tight check against a reference whose matmul operands are rounded to bf16
    # (exactly what the MXU consumes; f32 accumulation in both).
    ref_bf16 = _reference(x, weight, bias, gamma, beta, stride=stride, padding=padding,
                          operand_dtype=jnp.bfloat16)
    assert jnp.allclose(out, ref_bf16, atol=2e-3, rtol=2e-3), \
        float(jnp.max(jnp.abs(out - ref_bf16)))

    # Loose check against the exact f32 module semantics (difference = bf16 operand
    # rounding only).  The reference includes the conv bias, the kernel drops it --
    # they still match, proving the cancellation under train-mode BN.
    ref_f32 = _reference(x, weight, bias, gamma, beta, stride=stride, padding=padding)
    assert jnp.allclose(out, ref_f32, atol=5e-2, rtol=5e-2), \
        float(jnp.max(jnp.abs(out - ref_f32)))

    print("KERNEL_OK")
</pallas_src>

<mosaic_0001>
module attributes {stable_mosaic.version = 11 : i64} {
  func.func @_bn_leaky_kernel(%arg0: i32, %arg1: i32, %arg2: memref<2x8x384xf32, #tpu.memory_space<vmem>>, %arg3: memref<8x2xf32, #tpu.memory_space<vmem>>, %arg4: memref<8x2xf32, #tpu.memory_space<vmem>>, %arg5: memref<2x8x384xf32, #tpu.memory_space<vmem>>) attributes {dimension_semantics = [#tpu.dimension_semantics<parallel>, #tpu.dimension_semantics<parallel>], iteration_bounds = array<i64: 1, 1>, scalar_prefetch = 0 : i64, scratch_operands = 0 : i64, tpu.core_type = #tpu.core_type<tc>, window_params = [{transform_indices = @transform_0, window_bounds = array<i64: 2, 8, 384>}, {transform_indices = @transform_1, window_bounds = array<i64: 8, 2>}, {transform_indices = @transform_2, window_bounds = array<i64: 8, 2>}, {transform_indices = @transform_3, window_bounds = array<i64: 2, 8, 384>}]} {
    %c0 = arith.constant 0 : index
    %c0_0 = arith.constant 0 : index
    %0 = vector.load %arg3[%c0, %c0_0] : memref<8x2xf32, #tpu.memory_space<vmem>>, vector<8x2xf32>
    %1 = vector.extract_strided_slice %0 {offsets = [0, 0], sizes = [8, 1], strides = [1, 1]} : vector<8x2xf32> to vector<8x1xf32>
    %cst = arith.constant 0.001953125 : f32
    %2 = vector.broadcast %cst : f32 to vector<8x1xf32>
    %3 = arith.mulf %1, %2 : vector<8x1xf32>
    %4 = vector.extract_strided_slice %0 {offsets = [0, 1], sizes = [8, 1], strides = [1, 1]} : vector<8x2xf32> to vector<8x1xf32>
    %cst_1 = arith.constant 0.001953125 : f32
    %5 = vector.broadcast %cst_1 : f32 to vector<8x1xf32>
    %6 = arith.mulf %4, %5 : vector<8x1xf32>
    %7 = arith.mulf %3, %3 : vector<8x1xf32>
    %8 = arith.subf %6, %7 : vector<8x1xf32>
    %c0_2 = arith.constant 0 : index
    %c0_3 = arith.constant 0 : index
    %9 = vector.load %arg4[%c0_2, %c0_3] : memref<8x2xf32, #tpu.memory_space<vmem>>, vector<8x1xf32>
    %cst_4 = arith.constant 9.99999974E-6 : f32
    %10 = vector.broadcast %cst_4 : f32 to vector<8x1xf32>
    %11 = arith.addf %8, %10 : vector<8x1xf32>
    %12 = math.rsqrt %11 : vector<8x1xf32>
    %13 = arith.mulf %9, %12 : vector<8x1xf32>
    %c0_5 = arith.constant 0 : index
    %c1 = arith.constant 1 : index
    %14 = vector.load %arg4[%c0_5, %c1] : memref<8x2xf32, #tpu.memory_space<vmem>>, vector<8x1xf32>
    %15 = arith.mulf %3, %13 : vector<8x1xf32>
    %16 = arith.subf %14, %15 : vector<8x1xf32>
    %c0_6 = arith.constant 0 : index
    %c0_7 = arith.constant 0 : index
    %c0_8 = arith.constant 0 : index
    %17 = vector.load %arg2[%c0_6, %c0_7, %c0_8] : memref<2x8x384xf32, #tpu.memory_space<vmem>>, vector<2x8x384xf32>
    %18 = vector.shape_cast %13 : vector<8x1xf32> to vector<1x8x1xf32>
    %19 = vector.broadcast %18 : vector<1x8x1xf32> to vector<2x8x384xf32>
    %20 = arith.mulf %17, %19 : vector<2x8x384xf32>
    %21 = vector.shape_cast %16 : vector<8x1xf32> to vector<1x8x1xf32>
    %22 = vector.broadcast %21 : vector<1x8x1xf32> to vector<2x8x384xf32>
    %23 = arith.addf %20, %22 : vector<2x8x384xf32>
    %cst_9 = arith.constant 0.000000e+00 : f32
    %24 = vector.broadcast %cst_9 : f32 to vector<2x8x384xf32>
    %25 = arith.cmpf ogt, %23, %24 : vector<2x8x384xf32>
    %cst_10 = arith.constant 1.250000e-01 : f32
    %26 = vector.broadcast %cst_10 : f32 to vector<2x8x384xf32>
    %27 = arith.mulf %26, %23 : vector<2x8x384xf32>
    %28 = arith.select %25, %23, %27 : vector<2x8x384xi1>, vector<2x8x384xf32>
    %c0_11 = arith.constant 0 : index
    %c0_12 = arith.constant 0 : index
    %c0_13 = arith.constant 0 : index
    %29 = vector.load %arg5[%c0_11, %c0_12, %c0_13] : memref<2x8x384xf32, #tpu.memory_space<vmem>>, vector<2x8x384xf32>
    tpu.vector_store %arg5[%c0_11, %c0_12, %c0_13], %28 {strides = array<i32>} : memref<2x8x384xf32, #tpu.memory_space<vmem>>, vector<2x8x384xf32>,
    return
  }
  func.func @transform_0(%arg0: i32, %arg1: i32) -> (i32, i32, i32) {
    %c0_i32 = arith.constant 0 : i32
    %c0_i32_0 = arith.constant 0 : i32
    return %arg1, %arg0, %c0_i32 : i32, i32, i32
  }
  func.func @transform_1(%arg0: i32, %arg1: i32) -> (i32, i32) {
    %c0_i32 = arith.constant 0 : i32
    %c0_i32_0 = arith.constant 0 : i32
    return %arg0, %c0_i32 : i32, i32
  }
  func.func @transform_2(%arg0: i32, %arg1: i32) -> (i32, i32) {
    %c0_i32 = arith.constant 0 : i32
    %c0_i32_0 = arith.constant 0 : i32
    return %arg0, %c0_i32 : i32, i32
  }
  func.func @transform_3(%arg0: i32, %arg1: i32) -> (i32, i32, i32) {
    %c0_i32 = arith.constant 0 : i32
    %c0_i32_0 = arith.constant 0 : i32
    return %arg1, %arg0, %c0_i32 : i32, i32, i32
  }
}

module attributes {stable_mosaic.version = 11 : i64} {
  func.func @_conv_stats_kernel(%arg0: i32, %arg1: i32, %arg2: memref<1x4x512xbf16, #tpu.memory_space<vmem>>, %arg3: memref<9x8x4xbf16, #tpu.memory_space<vmem>>, %arg4: memref<1x384xf32, #tpu.memory_space<vmem>>, %arg5: memref<1x8x384xf32, #tpu.memory_space<vmem>>, %arg6: memref<8x2xf32, #tpu.memory_space<vmem>>) attributes {dimension_semantics = [#tpu.dimension_semantics<parallel>, #tpu.dimension_semantics<arbitrary>], iteration_bounds = array<i64: 1, 2>, scalar_prefetch = 0 : i64, scratch_operands = 0 : i64, tpu.core_type = #tpu.core_type<tc>, window_params = [{transform_indices = @transform_0, window_bounds = array<i64: 1, 4, 512>}, {transform_indices = @transform_1, window_bounds = array<i64: 9, 8, 4>}, {pipeline_mode = #tpu.pipeline_mode<synchronous>, transform_indices = @transform_2, window_bounds = array<i64: 1, 384>}, {transform_indices = @transform_3, window_bounds = array<i64: 1, 8, 384>}, {transform_indices = @transform_4, window_bounds = array<i64: 8, 2>}]} {
    %c0 = arith.constant 0 : index
    %c0_0 = arith.constant 0 : index
    %c0_1 = arith.constant 0 : index
    %0 = vector.load %arg2[%c0, %c0_0, %c0_1] : memref<1x4x512xbf16, #tpu.memory_space<vmem>>, vector<1x4x512xbf16>
    %1 = vector.shape_cast %0 : vector<1x4x512xbf16> to vector<4x512xbf16>
    %2 = arith.extf %1 : vector<4x512xbf16> to vector<4x512xf32>
    %cst = arith.constant 0.000000e+00 : f32
    %3 = vector.broadcast %cst : f32 to vector<8x384xf32>
    %4 = vector.extract_strided_slice %2 {offsets = [0, 0], sizes = [4, 384], strides = [1, 1]} : vector<4x512xf32> to vector<4x384xf32>
    %5 = arith.truncf %4 : vector<4x384xf32> to vector<4x384xbf16>
    %c0_2 = arith.constant 0 : index
    %c0_3 = arith.constant 0 : index
    %c0_4 = arith.constant 0 : index
    %6 = vector.load %arg3[%c0_2, %c0_3, %c0_4] : memref<9x8x4xbf16, #tpu.memory_space<vmem>>, vector<1x8x4xbf16>
    %7 = vector.shape_cast %6 : vector<1x8x4xbf16> to vector<8x4xbf16>
    %cst_5 = arith.constant dense<0.000000e+00> : vector<8x384xf32>
    %8 = tpu.matmul %7, %5, %cst_5 {dimension_numbers = #tpu.dot_dimension_numbers<[1], [0], [0], [1], [0, 0, 1, 1], [], []>} : vector<8x4xbf16>, vector<4x384xbf16>, vector<8x384xf32> -> vector<8x384xf32>
    %9 = arith.addf %3, %8 : vector<8x384xf32>
    %10 = vector.extract_strided_slice %2 {offsets = [0, 1], sizes = [4, 384], strides = [1, 1]} : vector<4x512xf32> to vector<4x384xf32>
    %11 = arith.truncf %10 : vector<4x384xf32> to vector<4x384xbf16>
    %c1 = arith.constant 1 : index
    %c0_6 = arith.constant 0 : index
    %c0_7 = arith.constant 0 : index
    %12 = vector.load %arg3[%c1, %c0_6, %c0_7] : memref<9x8x4xbf16, #tpu.memory_space<vmem>>, vector<1x8x4xbf16>
    %13 = vector.shape_cast %12 : vector<1x8x4xbf16> to vector<8x4xbf16>
    %cst_8 = arith.constant dense<0.000000e+00> : vector<8x384xf32>
    %14 = tpu.matmul %13, %11, %cst_8 {dimension_numbers = #tpu.dot_dimension_numbers<[1], [0], [0], [1], [0, 0, 1, 1], [], []>} : vector<8x4xbf16>, vector<4x384xbf16>, vector<8x384xf32> -> vector<8x384xf32>
    %15 = arith.addf %9, %14 : vector<8x384xf32>
    %16 = vector.extract_strided_slice %2 {offsets = [0, 2], sizes = [4, 384], strides = [1, 1]} : vector<4x512xf32> to vector<4x384xf32>
    %17 = arith.truncf %16 : vector<4x384xf32> to vector<4x384xbf16>
    %c2 = arith.constant 2 : index
    %c0_9 = arith.constant 0 : index
    %c0_10 = arith.constant 0 : index
    %18 = vector.load %arg3[%c2, %c0_9, %c0_10] : memref<9x8x4xbf16, #tpu.memory_space<vmem>>, vector<1x8x4xbf16>
    %19 = vector.shape_cast %18 : vector<1x8x4xbf16> to vector<8x4xbf16>
    %cst_11 = arith.constant dense<0.000000e+00> : vector<8x384xf32>
    %20 = tpu.matmul %19, %17, %cst_11 {dimension_numbers = #tpu.dot_dimension_numbers<[1], [0], [0], [1], [0, 0, 1, 1], [], []>} : vector<8x4xbf16>, vector<4x384xbf16>, vector<8x384xf32> -> vector<8x384xf32>
    %21 = arith.addf %15, %20 : vector<8x384xf32>
    %22 = vector.extract_strided_slice %2 {offsets = [0, 18], sizes = [4, 384], strides = [1, 1]} : vector<4x512xf32> to vector<4x384xf32>
    %23 = arith.truncf %22 : vector<4x384xf32> to vector<4x384xbf16>
    %c3 = arith.constant 3 : index
    %c0_12 = arith.constant 0 : index
    %c0_13 = arith.constant 0 : index
    %24 = vector.load %arg3[%c3, %c0_12, %c0_13] : memref<9x8x4xbf16, #tpu.memory_space<vmem>>, vector<1x8x4xbf16>
    %25 = vector.shape_cast %24 : vector<1x8x4xbf16> to vector<8x4xbf16>
    %cst_14 = arith.constant dense<0.000000e+00> : vector<8x384xf32>
    %26 = tpu.matmul %25, %23, %cst_14 {dimension_numbers = #tpu.dot_dimension_numbers<[1], [0], [0], [1], [0, 0, 1, 1], [], []>} : vector<8x4xbf16>, vector<4x384xbf16>, vector<8x384xf32> -> vector<8x384xf32>
    %27 = arith.addf %21, %26 : vector<8x384xf32>
    %28 = vector.extract_strided_slice %2 {offsets = [0, 19], sizes = [4, 384], strides = [1, 1]} : vector<4x512xf32> to vector<4x384xf32>
    %29 = arith.truncf %28 : vector<4x384xf32> to vector<4x384xbf16>
    %c4 = arith.constant 4 : index
    %c0_15 = arith.constant 0 : index
    %c0_16 = arith.constant 0 : index
    %30 = vector.load %arg3[%c4, %c0_15, %c0_16] : memref<9x8x4xbf16, #tpu.memory_space<vmem>>, vector<1x8x4xbf16>
    %31 = vector.shape_cast %30 : vector<1x8x4xbf16> to vector<8x4xbf16>
    %cst_17 = arith.constant dense<0.000000e+00> : vector<8x384xf32>
    %32 = tpu.matmul %31, %29, %cst_17 {dimension_numbers = #tpu.dot_dimension_numbers<[1], [0], [0], [1], [0, 0, 1, 1], [], []>} : vector<8x4xbf16>, vector<4x384xbf16>, vector<8x384xf32> -> vector<8x384xf32>
    %33 = arith.addf %27, %32 : vector<8x384xf32>
    %34 = vector.extract_strided_slice %2 {offsets = [0, 20], sizes = [4, 384], strides = [1, 1]} : vector<4x512xf32> to vector<4x384xf32>
    %35 = arith.truncf %34 : vector<4x384xf32> to vector<4x384xbf16>
    %c5 = arith.constant 5 : index
    %c0_18 = arith.constant 0 : index
    %c0_19 = arith.constant 0 : index
    %36 = vector.load %arg3[%c5, %c0_18, %c0_19] : memref<9x8x4xbf16, #tpu.memory_space<vmem>>, vector<1x8x4xbf16>
    %37 = vector.shape_cast %36 : vector<1x8x4xbf16> to vector<8x4xbf16>
    %cst_20 = arith.constant dense<0.000000e+00> : vector<8x384xf32>
    %38 = tpu.matmul %37, %35, %cst_20 {dimension_numbers = #tpu.dot_dimension_numbers<[1], [0], [0], [1], [0, 0, 1, 1], [], []>} : vector<8x4xbf16>, vector<4x384xbf16>, vector<8x384xf32> -> vector<8x384xf32>
    %39 = arith.addf %33, %38 : vector<8x384xf32>
    %40 = vector.extract_strided_slice %2 {offsets = [0, 36], sizes = [4, 384], strides = [1, 1]} : vector<4x512xf32> to vector<4x384xf32>
    %41 = arith.truncf %40 : vector<4x384xf32> to vector<4x384xbf16>
    %c6 = arith.constant 6 : index
    %c0_21 = arith.constant 0 : index
    %c0_22 = arith.constant 0 : index
    %42 = vector.load %arg3[%c6, %c0_21, %c0_22] : memref<9x8x4xbf16, #tpu.memory_space<vmem>>, vector<1x8x4xbf16>
    %43 = vector.shape_cast %42 : vector<1x8x4xbf16> to vector<8x4xbf16>
    %cst_23 = arith.constant dense<0.000000e+00> : vector<8x384xf32>
    %44 = tpu.matmul %43, %41, %cst_23 {dimension_numbers = #tpu.dot_dimension_numbers<[1], [0], [0], [1], [0, 0, 1, 1], [], []>} : vector<8x4xbf16>, vector<4x384xbf16>, vector<8x384xf32> -> vector<8x384xf32>
    %45 = arith.addf %39, %44 : vector<8x384xf32>
    %46 = vector.extract_strided_slice %2 {offsets = [0, 37], sizes = [4, 384], strides = [1, 1]} : vector<4x512xf32> to vector<4x384xf32>
    %47 = arith.truncf %46 : vector<4x384xf32> to vector<4x384xbf16>
    %c7 = arith.constant 7 : index
    %c0_24 = arith.constant 0 : index
    %c0_25 = arith.constant 0 : index
    %48 = vector.load %arg3[%c7, %c0_24, %c0_25] : memref<9x8x4xbf16, #tpu.memory_space<vmem>>, vector<1x8x4xbf16>
    %49 = vector.shape_cast %48 : vector<1x8x4xbf16> to vector<8x4xbf16>
    %cst_26 = arith.constant dense<0.000000e+00> : vector<8x384xf32>
    %50 = tpu.matmul %49, %47, %cst_26 {dimension_numbers = #tpu.dot_dimension_numbers<[1], [0], [0], [1], [0, 0, 1, 1], [], []>} : vector<8x4xbf16>, vector<4x384xbf16>, vector<8x384xf32> -> vector<8x384xf32>
    %51 = arith.addf %45, %50 : vector<8x384xf32>
    %52 = vector.extract_strided_slice %2 {offsets = [0, 38], sizes = [4, 384], strides = [1, 1]} : vector<4x512xf32> to vector<4x384xf32>
    %53 = arith.truncf %52 : vector<4x384xf32> to vector<4x384xbf16>
    %c8 = arith.constant 8 : index
    %c0_27 = arith.constant 0 : index
    %c0_28 = arith.constant 0 : index
    %54 = vector.load %arg3[%c8, %c0_27, %c0_28] : memref<9x8x4xbf16, #tpu.memory_space<vmem>>, vector<1x8x4xbf16>
    %55 = vector.shape_cast %54 : vector<1x8x4xbf16> to vector<8x4xbf16>
    %cst_29 = arith.constant dense<0.000000e+00> : vector<8x384xf32>
    %56 = tpu.matmul %55, %53, %cst_29 {dimension_numbers = #tpu.dot_dimension_numbers<[1], [0], [0], [1], [0, 0, 1, 1], [], []>} : vector<8x4xbf16>, vector<4x384xbf16>, vector<8x384xf32> -> vector<8x384xf32>
    %57 = arith.addf %51, %56 : vector<8x384xf32>
    %c0_30 = arith.constant 0 : index
    %c0_31 = arith.constant 0 : index
    %c0_32 = arith.constant 0 : index
    %58 = vector.load %arg5[%c0_30, %c0_31, %c0_32] : memref<1x8x384xf32, #tpu.memory_space<vmem>>, vector<1x8x384xf32>
    %59 = vector.shape_cast %58 : vector<1x8x384xf32> to vector<8x384xf32>
    %60 = vector.shape_cast %57 : vector<8x384xf32> to vector<1x8x384xf32>
    tpu.vector_store %arg5[%c0_30, %c0_31, %c0_32], %60 {strides = array<i32>} : memref<1x8x384xf32, #tpu.memory_space<vmem>>, vector<1x8x384xf32>,
    %c0_33 = arith.constant 0 : index
    %c0_34 = arith.constant 0 : index
    %61 = vector.load %arg4[%c0_33, %c0_34] : memref<1x384xf32, #tpu.memory_space<vmem>>, vector<1x384xf32>
    %62 = vector.broadcast %61 : vector<1x384xf32> to vector<8x384xf32>
    %63 = arith.mulf %57, %62 : vector<8x384xf32>
    %cst_35 = arith.constant dense<0.000000e+00> : vector<8xf32>
    %64 = vector.multi_reduction <add>, %63, %cst_35 [1] : vector<8x384xf32> to vector<8xf32>
    %65 = vector.shape_cast %64 : vector<8xf32> to vector<8x1xf32>
    %66 = arith.mulf %63, %57 : vector<8x384xf32>
    %cst_36 = arith.constant dense<0.000000e+00> : vector<8xf32>
    %67 = vector.multi_reduction <add>, %66, %cst_36 [1] : vector<8x384xf32> to vector<8xf32>
    %68 = vector.shape_cast %67 : vector<8xf32> to vector<8x1xf32>
    %69 = tpu.concatenate %65, %68 in 1 : vector<8x1xf32>, vector<8x1xf32> -> vector<8x2xf32>
    %c0_i32 = arith.constant 0 : i32
    %70 = arith.cmpi eq, %arg1, %c0_i32 : i32
    %71 = arith.extui %70 : i1 to i32
    %c0_i32_37 = arith.constant 0 : i32
    %72 = arith.cmpi ne, %71, %c0_i32_37 : i32
    scf.if %72 {
      %c0_40 = arith.constant 0 : index
      %c0_41 = arith.constant 0 : index
      %76 = vector.load %arg6[%c0_40, %c0_41] : memref<8x2xf32, #tpu.memory_space<vmem>>, vector<8x2xf32>
      tpu.vector_store %arg6[%c0_40, %c0_41], %69 {strides = array<i32>} : memref<8x2xf32, #tpu.memory_space<vmem>>, vector<8x2xf32>,
    } else {
    }
    %c0_i32_38 = arith.constant 0 : i32
    %73 = arith.cmpi ne, %arg1, %c0_i32_38 : i32
    %74 = arith.extui %73 : i1 to i32
    %c0_i32_39 = arith.constant 0 : i32
    %75 = arith.cmpi ne, %74, %c0_i32_39 : i32
    scf.if %75 {
      %c0_40 = arith.constant 0 : index
      %c0_41 = arith.constant 0 : index
      %76 = vector.load %arg6[%c0_40, %c0_41] : memref<8x2xf32, #tpu.memory_space<vmem>>, vector<8x2xf32>
      %77 = arith.addf %76, %69 : vector<8x2xf32>
      %c0_42 = arith.constant 0 : index
      %c0_43 = arith.constant 0 : index
      %78 = vector.load %arg6[%c0_42, %c0_43] : memref<8x2xf32, #tpu.memory_space<vmem>>, vector<8x2xf32>
      tpu.vector_store %arg6[%c0_42, %c0_43], %77 {strides = array<i32>} : memref<8x2xf32, #tpu.memory_space<vmem>>, vector<8x2xf32>,
    } else {
    }
    return
  }
  func.func @transform_0(%arg0: i32, %arg1: i32) -> (i32, i32, i32) {
    %c0_i32 = arith.constant 0 : i32
    %c0_i32_0 = arith.constant 0 : i32
    %c0_i32_1 = arith.constant 0 : i32
    return %arg1, %c0_i32, %c0_i32_0 : i32, i32, i32
  }
  func.func @transform_1(%arg0: i32, %arg1: i32) -> (i32, i32, i32) {
    %c0_i32 = arith.constant 0 : i32
    %c0_i32_0 = arith.constant 0 : i32
    %c0_i32_1 = arith.constant 0 : i32
    return %c0_i32, %arg0, %c0_i32_0 : i32, i32, i32
  }
  func.func @transform_2(%arg0: i32, %arg1: i32) -> (i32, i32) {
    %c0_i32 = arith.constant 0 : i32
    %c0_i32_0 = arith.constant 0 : i32
    %c0_i32_1 = arith.constant 0 : i32
    return %c0_i32, %c0_i32_0 : i32, i32
  }
  func.func @transform_3(%arg0: i32, %arg1: i32) -> (i32, i32, i32) {
    %c0_i32 = arith.constant 0 : i32
    %c0_i32_0 = arith.constant 0 : i32
    return %arg1, %arg0, %c0_i32 : i32, i32, i32
  }
  func.func @transform_4(%arg0: i32, %arg1: i32) -> (i32, i32) {
    %c0_i32 = arith.constant 0 : i32
    %c0_i32_0 = arith.constant 0 : i32
    return %arg0, %c0_i32 : i32, i32
  }
}

</mosaic_0001>

<bundles_post_ra>
// kernel: darknet_conv_bn_leaky.3
= control target key start
LH: loop header
LB: loop body
LE: loop exit
PB: predicated region body
PF: predicated region fallthrough
CT: control target
= control target key end

     0   :  { %s100_s14 = smov 1   ;;  %v101_v6 = vmov 0   ;;  %s102_s15 = smov 127   ;;  %v103_v8 = vmov 1   ;;  %s166_s1 = inlined_call_operand.vmem [shape: f32[8,2], index: 1, kind: input, shape index: {}]   ;;  %s167_s2 = inlined_call_operand.vmem [shape: f32[8,2], index: 2, kind: input, shape index: {}]   ;;  %s168_s0 = inlined_call_operand.vmem [shape: f32[2,8,384], index: 0, kind: input, shape index: {}, may-alias: {0,3}]   ;;  %s169_s3 = inlined_call_operand.vmem [shape: f32[2,8,384], index: 3, kind: output, shape index: {}, may-alias: {0,3}]  }
   0x1   :  { %v14_v0 = vld [vmem:[%s166_s1] sm:$0xff]  ;;  %96 = vset.pattern.permute.xlu1 %v101_v6  ;;  %97 = vset.pattern.permute.xlu0 %v103_v8  ;;  %v37_v17 = vld [vmem:[%s168_s0 + $0x8] sm:$0xff]  ;;  %v38_v18 = vld [vmem:[%s168_s0 + $0x10] sm:$0xff] }
   0x2   :  { %v15_v1 = vmul.f32 0.001953125, %v14_v0  ;;  %v22_v9 = vld [vmem:[%s167_s2] sm:$0xff]  ;;  %v39_v19 = vld [vmem:[%s168_s0 + $0x18] sm:$0xff]  ;;  %v41_v21 = vld [vmem:[%s168_s0 + $0x28] sm:$0xff] }
   0x3   :  { %v36_v15 = vld [vmem:[%s168_s0] sm:$0xff] }
   0x4   :  { %v16_v2 = vmul.f32 %v15_v1, %v15_v1  ;;  %v40_v20 = vld [vmem:[%s168_s0 + $0x20] sm:$0xff] }
   0x6   :  { %18 = vrot.lane.b32.xlu0 %v16_v2, %s100_s14 }
  0x78   :  { %v19_v3 = vpop.permute.xlu0 %18 }
  0x79   :  { %v21_v4 = vsub.f32 %v15_v1, %v19_v3 }
  0x7b   :  { %v23_v5 = vadd.f32 1e-05, %v21_v4 }
  0x7d   :  { %98 = vrsqrt.f32 %v23_v5 }
  0x87   :  { %v99_v7 = vpop.eup %98 }
  0x88   :  { %26 = vrot.lane.b32.xlu0 %v99_v7, %s102_s15 }
  0xfa   :  { %v27_v10 = vpop.permute.xlu0 %26 }
  0xfb   :  { %v29_v11 = vmul.f32 %v27_v10, %v22_v9 }
  0xfd   :  { %v30_v12 = vmul.f32 %v29_v11, %v15_v1 }
  0xff   :  { %32 = vrot.lane.b32.xlu1 %v30_v12, %s100_s14 }
 0x103   :  { %44 = vperm.xlu1 %96, %v29_v11  }
 0x171   :  { %v33_v13 = vpop.permute.xlu1 %32 }
 0x172   :  { %v35_v14 = vsub.f32 %v22_v9, %v33_v13 }
 0x174   :  { %55 = vperm.xlu0 %97, %v35_v14  }
 0x182   :  { %v45_v16 = vpop.permute.xlu1 %44 }
 0x183   :  { %v47_v22 = vmul.f32 %v45_v16, %v36_v15  ;;  %v48_v23 = vmul.f32 %v45_v16, %v37_v17  ;;  %v49_v24 = vmul.f32 %v45_v16, %v38_v18  ;;  %v50_v25 = vmul.f32 %v45_v16, %v39_v19 }
 0x184   :  { %v51_v26 = vmul.f32 %v45_v16, %v40_v20  ;;  %v52_v27 = vmul.f32 %v45_v16, %v41_v21 }
 0x1f3   :  { %v56_v28 = vpop.permute.xlu0 %55 }
 0x1f4   :  { %v58_v29 = vadd.f32 %v56_v28, %v47_v22  ;;  %v59_v30 = vadd.f32 %v56_v28, %v48_v23  ;;  %v60_v31 = vadd.f32 %v56_v28, %v49_v24  ;;  %v61_v32 = vadd.f32 %v56_v28, %v50_v25 }
 0x1f5   :  { %v62_v33 = vadd.f32 %v56_v28, %v51_v26  ;;  %v63_v34 = vadd.f32 %v56_v28, %v52_v27 }
 0x1f6   :  { %vm64_vm0 = vcmp.gt.f32.partialorder %v58_v29, 0.0  ;;  %vm65_vm1 = vcmp.gt.f32.partialorder %v59_v30, 0.0  ;;  %vm66_vm2 = vcmp.gt.f32.partialorder %v60_v31, 0.0  ;;  %vm67_vm3 = vcmp.gt.f32.partialorder %v61_v32, 0.0 }
 0x1f7   :  { %vm68_vm4 = vcmp.gt.f32.partialorder %v62_v33, 0.0  ;;  %vm69_vm5 = vcmp.gt.f32.partialorder %v63_v34, 0.0  ;;  %v70_v35 = vmul.f32 0.125, %v58_v29  ;;  %v71_v36 = vmul.f32 0.125, %v59_v30 }
 0x1f8   :  { %v72_v37 = vmul.f32 0.125, %v60_v31  ;;  %v73_v38 = vmul.f32 0.125, %v61_v32  ;;  %v74_v39 = vmul.f32 0.125, %v62_v33  ;;  %v75_v40 = vmul.f32 0.125, %v63_v34 }
 0x1f9   :  { %v76_v41 = vsel %vm64_vm0, %v58_v29, %v70_v35  ;;  %v77_v42 = vsel %vm65_vm1, %v59_v30, %v71_v36 }
 0x1fa   :  { %v78_v43 = vsel %vm66_vm2, %v60_v31, %v72_v37  ;;  %v79_v44 = vsel %vm67_vm3, %v61_v32, %v73_v38  ;;  %v80_v45 = vsel %vm68_vm4, %v62_v33, %v74_v39  ;;  %v81_v46 = vsel %vm69_vm5, %v63_v34, %v75_v40  ;;  %82 = vst [vmem:[%s169_s3] sm:$0xff] %v76_v41 }
 0x1fb   :  { %83 = vst [vmem:[%s169_s3 + $0x8] sm:$0xff] %v77_v42  ;;  %84 = vst [vmem:[%s169_s3 + $0x10] sm:$0xff] %v78_v43 }
 0x1fc   :  { %85 = vst [vmem:[%s169_s3 + $0x18] sm:$0xff] %v79_v44  ;;  %86 = vst [vmem:[%s169_s3 + $0x20] sm:$0xff] %v80_v45 }
 0x1fd   :  { %87 = vst [vmem:[%s169_s3 + $0x28] sm:$0xff] %v81_v46 }

// kernel: darknet_conv_bn_leaky.2
= control target key start
LH: loop header
LB: loop body
LE: loop exit
PB: predicated region body
PF: predicated region fallthrough
CT: control target
= control target key end

     0   :  { %s1702_s15 = smov 0   ;;  %s1704_s16 = smov 0   ;;  %s1905_s0 = inlined_call_operand.vmem [shape: bf16[2,4,512], index: 0, kind: input, shape index: {}]   ;;  %s1906_s1 = inlined_call_operand.vmem [shape: bf16[9,8,4], index: 1, kind: input, shape index: {}]   ;;  %s1907_s2 = inlined_call_operand.vmem [shape: f32[1,384], index: 2, kind: input, shape index: {}]   ;;  %s1908_s3 = inlined_call_operand.vmem [shape: f32[2,8,384], index: 3, kind: output, shape index: {0}]   ;;  %s1909_s4 = inlined_call_operand.vmem [shape: f32[8,2], index: 4, kind: output, shape index: {1}]  }
   0x1   :  { %s1706_s17 = smov 0  }
   0x2 LB: > { %s24_s18 = sadd.s32 1, %s1660_s16  ;;  %p1421_p0 = scmp.ge.s32.totalorder %s1664_s17, 1  ;;  %s1664_s17 = sphi %s1706_s17, %s15_s17   ;;  %s1660_s16 = sphi %s1704_s16, %s1911_s16   ;;  %s1656_s15 = sphi %s1702_s15, %s1910_s15  }
   0x3   : > { %p25_p1 = scmp.ge.s32.totalorder %s24_s18, 2  ;;  %p188_p2 = scmp.lt.s32.totalorder %s1664_s17, 3 }
   0x5   : > { %s1913_s18 = smov (%p25_p1, %s24_s18), 0  ;;  %p189_p3 = pnand %p1421_p0, %p188_p2 }
   0x6   : > { %p226_p4 = scmp.lt.s32.totalorder (!%p189_p3), %s1656_s15, 1  ;;  %v1666_v0 = vmov (!%p189_p3), 0.0   ;;  %v1667_v1 = vmov (!%p189_p3), 0   ;;  %vm1668_vm0 = vmmov (!%p189_p3), 0   ;;  %s1669_s24 = smov (!%p189_p3), 127   ;;  %vm277_vm1 = vcmask (!%p189_p3), 1039360  }
   0x7   : > { %192 = sbr.rel (%p189_p3) target bundleno = 616 (0x268), region = 32  ;;  %1486 = vmatprep.subr.bf16.mxu1 (!%p189_p3), %v1666_v0  ;;  %327 = vmatprep.mubr.bf16.mxu0 (!%p189_p3), %v1667_v1  ;;  %s1670_s25 = smov (!%p189_p3), 126   ;;  %vm285_vm2 = vcmask (!%p189_p3), 1041408   ;;  %v1427_v20 = vld [vmem:[%s1906_s1 + $0x4] sm:$0xf] (!%p189_p3)  ;;  %vm281_vm3 = vcmask (!%p189_p3), 31744  }
   0x8   : > { %1488 = vmatprep.mubr.msk.bf16.mxu1 (!%p189_p3), %vm1668_vm0, %v1666_v0  ;;  %s1671_s26 = smov (!%p189_p3), 110   ;;  %s1672_s27 = smov (!%p189_p3), 109   ;;  %vm479_vm4 = vcmask (!%p189_p3), 1031168   ;;  %v259_v31 = vld [vmem:[%s1906_s1] sm:$0xf] (!%p189_p3)  ;;  %vm589_vm5 = vcmask (!%p189_p3), 900096  }
   0x9   : > { %s1673_s28 = smov (!%p189_p3), 108   ;;  %s1674_s29 = smov (!%p189_p3), 92   ;;  %v1434_v41 = vld [vmem:[%s1906_s1 + $0x8] sm:$0xf] (!%p189_p3)  ;;  %vm699_vm6 = vcmask (!%p189_p3), 891904   ;;  %vm809_vm7 = vcmask (!%p189_p3), 883712  }
   0xa   : > { %s1675_s30 = smov (!%p189_p3), 91   ;;  %s1676_s5 = smov (!%p189_p3), 90   ;;  %v1438_v51 = vld [vmem:[%s1906_s1 + $0xc] sm:$0xf] (!%p189_p3)  ;;  %v1442_v61 = vld [vmem:[%s1906_s1 + $0x10] sm:$0xf] (!%p189_p3) }
   0xb   : > { %vm919_vm8 = vcmask (!%p189_p3), 752640   ;;  %vm1029_vm9 = vcmask (!%p189_p3), 744448   ;;  %vm1139_vm10 = vcmask (!%p189_p3), 736256   ;;  %vm1273_vm11 = vcmask (!%p189_p3), 7168   ;;  %p1462_p5 = scmp.ne.s32.totalorder (!%p189_p3), %s1656_s15, 0 }
   0xe   : > { %s1725_s19 = scalar_select %p226_p4, %s1656_s15, 1 }
   0xf   : > { %vm1279_vm12 = vcmask (!%p1462_p5), 15360  }
  0x10   : > { %s1467_s20 = sshll.u32 %s1725_s19, 3 }
  0x11   : > { %s230_s23 = scalar_lea.vmem %s1905_s0, %s1467_s20 }
  0x12   : > { %v249_v2 = vld [vmem:[%s230_s23] sm:$0xff] }
  0x13   : > { %v1734_v3 = vcombine.high %v249_v2, %v249_v2  ;;  %v1736_v4 = vcombine.low %v249_v2, %v249_v2  ;;  %v251_v5 = vunpack.c.h.bf16 %v249_v2  ;;  %v250_v6 = vunpack.c.l.bf16 %v249_v2 }
  0x15   : > { %273 = vrot.lane.b32.xlu1 %v1734_v3, %s1669_s24  ;;  %269 = vrot.lane.b32.xlu0 %v1736_v4, %s1669_s24  ;;  %v260_v7 = vcombine.high %v251_v5, %v251_v5  ;;  %v254_v8 = vcombine.high %v250_v6, %v250_v6  ;;  %v380_v21 = vsel %vm285_vm2, %v1736_v4, 0  ;;  %v386_v22 = vsel %vm285_vm2, %v1734_v3, 0 }
  0x17   : > { %v262_v9 = vpack.c.bf16 %v260_v7, %v260_v7  ;;  %v257_v10 = vpack.c.bf16 %v254_v8, %v254_v8 }
  0x19   : > { %275 = vrot.lane.b32.xlu1 %v262_v9, %s1669_s24  ;;  %271 = vrot.lane.b32.xlu0 %v257_v10, %s1669_s24 }
  0x1d   : > { %471 = vrot.lane.b32.xlu0 %v1736_v4, %s1670_s25  ;;  %473 = vrot.lane.b32.xlu1 %v257_v10, %s1670_s25 }
  0x21   : > { %475 = vrot.lane.b32.xlu0 %v1734_v3, %s1670_s25  ;;  %477 = vrot.lane.b32.xlu1 %v262_v9, %s1670_s25 }
  0x25   : > { %581 = vrot.lane.b32.xlu0 %v1736_v4, %s1671_s26  ;;  %583 = vrot.lane.b32.xlu1 %v257_v10, %s1671_s26 }
  0x29   : > { %585 = vrot.lane.b32.xlu0 %v1734_v3, %s1671_s26  ;;  %587 = vrot.lane.b32.xlu1 %v262_v9, %s1671_s26 }
  0x2d   : > { %691 = vrot.lane.b32.xlu0 %v1736_v4, %s1672_s27  ;;  %693 = vrot.lane.b32.xlu1 %v257_v10, %s1672_s27 }
  0x31   : > { %695 = vrot.lane.b32.xlu0 %v1734_v3, %s1672_s27  ;;  %697 = vrot.lane.b32.xlu1 %v262_v9, %s1672_s27 }
  0x35   : > { %801 = vrot.lane.b32.xlu0 %v1736_v4, %s1673_s28  ;;  %803 = vrot.lane.b32.xlu1 %v257_v10, %s1673_s28 }
  0x39   : > { %805 = vrot.lane.b32.xlu0 %v1734_v3, %s1673_s28  ;;  %807 = vrot.lane.b32.xlu1 %v262_v9, %s1673_s28 }
  0x3d   : > { %911 = vrot.lane.b32.xlu0 %v1736_v4, %s1674_s29  ;;  %913 = vrot.lane.b32.xlu1 %v257_v10, %s1674_s29 }
  0x41   : > { %915 = vrot.lane.b32.xlu0 %v1734_v3, %s1674_s29  ;;  %917 = vrot.lane.b32.xlu1 %v262_v9, %s1674_s29  ;;  %s1604_s29 = smul.u32 24, %s1725_s19 }
  0x43   : > { %s243_s8 = scalar_lea.vmem %s1908_s3, %s1604_s29 }
  0x45   : > { %1021 = vrot.lane.b32.xlu0 %v1736_v4, %s1675_s30  ;;  %1023 = vrot.lane.b32.xlu1 %v257_v10, %s1675_s30 }
  0x49   : > { %1025 = vrot.lane.b32.xlu0 %v1734_v3, %s1675_s30  ;;  %1027 = vrot.lane.b32.xlu1 %v262_v9, %s1675_s30 }
  0x4d   : > { %1131 = vrot.lane.b32.xlu0 %v1736_v4, %s1676_s5  ;;  %1133 = vrot.lane.b32.xlu1 %v257_v10, %s1676_s5 }
  0x51   : > { %1135 = vrot.lane.b32.xlu0 %v1734_v3, %s1676_s5  ;;  %1137 = vrot.lane.b32.xlu1 %v262_v9, %s1676_s5  ;;  %v1446_v9 = vld [vmem:[%s1906_s1 + $0x14] sm:$0xf] }
  0x87   : > { %v274_v11 = vpop.permute.xlu1 %273  ;;  %v270_v12 = vpop.permute.xlu0 %269 }
  0x8b   : > { %v276_v13 = vpop.permute.xlu1 %275  ;;  %v272_v14 = vpop.permute.xlu0 %271 }
  0x8c   : > { %v279_v15 = vsel %vm277_vm1, %v272_v14, %v274_v11  ;;  %v278_v16 = vsel %vm277_vm1, %v270_v12, %v272_v14  ;;  %v280_v17 = vsel %vm277_vm1, %v274_v11, %v276_v13 }
  0x8d   : > { %1428 = vmatprep.subr.msk.bf16.mxu0 %vm285_vm2, %v279_v15  ;;  %v287_v18 = vsel %vm285_vm2, %v278_v16, 0  ;;  %v293_v19 = vsel %vm285_vm2, %v280_v17, 0 }
  0x8e   : > { %296 = vmatpush1.bf16.msra.mxu0 %v287_v18  ;;  %1487 = vmatpush3.bf16.msra.mxu1 %v293_v19  ;;  %v1450_v19 = vld [vmem:[%s1906_s1 + $0x18] sm:$0xf] }
  0x8f   : > { %1431 = vmatprep.subr.msk.bf16.mxu0 %vm285_vm2, %v257_v10  ;;  %1492 = vmatprep.subr.bf16.mxu1 %v1666_v0  ;;  %v472_v23 = vpop.permute.xlu0 %471  ;;  %v474_v24 = vpop.permute.xlu1 %473 }
  0x90   : > { %v480_v29 = vsel %vm479_vm4, %v472_v23, %v474_v24 }
  0x91   : > { %1429 = vmatmul.mubr.msk.bf16.vlgmr.msra.gmra.mrb[0].mxu0 %vm281_vm3, %v1427_v20  ;;  %1489 = vmatmul.mubr.msk.bf16.vlgmr.msra.gmra.mrb[0].mxu1 %vm281_vm3, %v1427_v20  ;;  %v487_v33 = vsel %vm285_vm2, %v480_v29, 0 }
  0x92   : > { %389 = vmatpush1.bf16.msra.mxu0 %v380_v21  ;;  %1493 = vmatpush3.bf16.msra.mxu1 %v386_v22 }
  0x93   : > { %v476_v25 = vpop.permute.xlu0 %475  ;;  %420 = vmatprep.mubr.bf16.mxu0 %v1667_v1  ;;  %1494 = vmatprep.mubr.msk.bf16.mxu1 %vm1668_vm0, %v1666_v0  ;;  %v478_v27 = vpop.permute.xlu1 %477 }
  0x94   : > { %v481_v26 = vsel %vm479_vm4, %v474_v24, %v476_v25  ;;  %1498 = vmatprep.subr.bf16.mxu1 %v1666_v0  ;;  %v482_v30 = vsel %vm479_vm4, %v476_v25, %v478_v27 }
  0x95   : > { %1435 = vmatprep.subr.msk.bf16.mxu0 %vm285_vm2, %v481_v26  ;;  %v493_v34 = vsel %vm285_vm2, %v482_v30, 0 }
  0x97   : > { %v582_v28 = vpop.permute.xlu0 %581  ;;  %v584_v32 = vpop.permute.xlu1 %583 }
  0x98   : > { %v590_v39 = vsel %vm589_vm5, %v582_v28, %v584_v32  ;;  %v1454_v28 = vld [vmem:[%s1906_s1 + $0x1c] sm:$0xf] }
  0x99   : > { %v597_v44 = vsel %vm285_vm2, %v590_v39, 0 }
  0x9b   : > { %v586_v35 = vpop.permute.xlu0 %585  ;;  %v588_v38 = vpop.permute.xlu1 %587 }
  0x9c   : > { %v591_v36 = vsel %vm589_vm5, %v584_v32, %v586_v35  ;;  %v592_v40 = vsel %vm589_vm5, %v586_v35, %v588_v38  ;;  %v1244_v32 = vlaneseq  ;;  %v1242_v35 = vld [vmem:[%s1907_s2] sm:$0x7] }
  0x9d   : > { %1432 = vmatmul.mubr.msk.bf16.vlgmr.msra.gmra.mrb[0].mxu0 %vm281_vm3, %v259_v31  ;;  %1495 = vmatmul.mubr.msk.bf16.vlgmr.msra.gmra.mrb[0].mxu1 %vm281_vm3, %v259_v31  ;;  %v603_v45 = vsel %vm285_vm2, %v592_v40, 0  ;;  %v1458_v31 = vld [vmem:[%s1906_s1 + $0x20] sm:$0xf] }
  0x9e   : > { %496 = vmatpush1.bf16.msra.mxu0 %v487_v33  ;;  %1499 = vmatpush3.bf16.msra.mxu1 %v493_v34  ;;  %v1245_v33 = vshrl.u32 %v1244_v32, 7 }
  0x9f   : > { %527 = vmatprep.mubr.bf16.mxu0 %v1667_v1  ;;  %1500 = vmatprep.mubr.msk.bf16.mxu1 %vm1668_vm0, %v1666_v0  ;;  %v692_v37 = vpop.permute.xlu0 %691  ;;  %v694_v42 = vpop.permute.xlu1 %693 }
  0xa0   : > { %1439 = vmatprep.subr.msk.bf16.mxu0 %vm285_vm2, %v591_v36  ;;  %1504 = vmatprep.subr.bf16.mxu1 %v1666_v0  ;;  %v700_v49 = vsel %vm699_vm6, %v692_v37, %v694_v42  ;;  %v1246_v34 = vsub.s32 0, %v1245_v33  ;;  %v1254_v36 = vsub.s32 2, %v1245_v33 }
  0xa1   : > { %v707_v54 = vsel %vm285_vm2, %v700_v49, 0 }
  0xa2   : > { %v1247_v37 = vrot.slane %v1242_v35, %v1246_v34  ;;  %v1255_v38 = vrot.slane %v1242_v35, %v1254_v36 }
  0xa3   : > { %v696_v43 = vpop.permute.xlu0 %695  ;;  %v698_v48 = vpop.permute.xlu1 %697 }
  0xa4   : > { %v701_v46 = vsel %vm699_vm6, %v694_v42, %v696_v43  ;;  %v702_v50 = vsel %vm699_vm6, %v696_v43, %v698_v48 }
  0xa5   : > { %v713_v55 = vsel %vm285_vm2, %v702_v50, 0 }
  0xa7   : > { %v802_v47 = vpop.permute.xlu0 %801  ;;  %v804_v52 = vpop.permute.xlu1 %803 }
  0xa8   : > { %v810_v59 = vsel %vm809_vm7, %v802_v47, %v804_v52 }
  0xa9   : > { %1436 = vmatmul.mubr.msk.bf16.vlgmr.msra.gmra.mrb[0].mxu0 %vm281_vm3, %v1434_v41  ;;  %1501 = vmatmul.mubr.msk.bf16.vlgmr.msra.gmra.mrb[0].mxu1 %vm281_vm3, %v1434_v41  ;;  %v817_v2 = vsel %vm285_vm2, %v810_v59, 0 }
  0xaa   : > { %606 = vmatpush1.bf16.msra.mxu0 %v597_v44  ;;  %1505 = vmatpush3.bf16.msra.mxu1 %v603_v45 }
  0xab   : > { %637 = vmatprep.mubr.bf16.mxu0 %v1667_v1  ;;  %1506 = vmatprep.mubr.msk.bf16.mxu1 %vm1668_vm0, %v1666_v0  ;;  %v806_v53 = vpop.permute.xlu0 %805  ;;  %v808_v58 = vpop.permute.xlu1 %807 }
  0xac   : > { %1443 = vmatprep.subr.msk.bf16.mxu0 %vm285_vm2, %v701_v46  ;;  %1510 = vmatprep.subr.bf16.mxu1 %v1666_v0  ;;  %v811_v56 = vsel %vm809_vm7, %v804_v52, %v806_v53  ;;  %v812_v60 = vsel %vm809_vm7, %v806_v53, %v808_v58 }
  0xad   : > { %v823_v3 = vsel %vm285_vm2, %v812_v60, 0 }
  0xaf   : > { %v912_v57 = vpop.permute.xlu0 %911  ;;  %v914_v62 = vpop.permute.xlu1 %913 }
  0xb0   : > { %v920_v7 = vsel %vm919_vm8, %v912_v57, %v914_v62 }
  0xb1   : > { %v927_v12 = vsel %vm285_vm2, %v920_v7, 0 }
  0xb3   : > { %v916_v63 = vpop.permute.xlu0 %915  ;;  %v918_v6 = vpop.permute.xlu1 %917 }
  0xb4   : > { %v921_v4 = vsel %vm919_vm8, %v914_v62, %v916_v63  ;;  %v922_v8 = vsel %vm919_vm8, %v916_v63, %v918_v6 }
  0xb5   : > { %1440 = vmatmul.mubr.msk.bf16.vlgmr.msra.gmra.mrb[0].mxu0 %vm281_vm3, %v1438_v51  ;;  %1507 = vmatmul.mubr.msk.bf16.vlgmr.msra.gmra.mrb[0].mxu1 %vm281_vm3, %v1438_v51  ;;  %v933_v13 = vsel %vm285_vm2, %v922_v8, 0 }
  0xb6   : > { %716 = vmatpush1.bf16.msra.mxu0 %v707_v54  ;;  %1511 = vmatpush3.bf16.msra.mxu1 %v713_v55 }
  0xb7   : > { %747 = vmatprep.mubr.bf16.mxu0 %v1667_v1  ;;  %1512 = vmatprep.mubr.msk.bf16.mxu1 %vm1668_vm0, %v1666_v0  ;;  %v1022_v5 = vpop.permute.xlu0 %1021  ;;  %v1024_v10 = vpop.permute.xlu1 %1023 }
  0xb8   : > { %1447 = vmatprep.subr.msk.bf16.mxu0 %vm285_vm2, %v811_v56  ;;  %1516 = vmatprep.subr.bf16.mxu1 %v1666_v0  ;;  %v1030_v17 = vsel %vm1029_vm9, %v1022_v5, %v1024_v10 }
  0xb9   : > { %v1037_v22 = vsel %vm285_vm2, %v1030_v17, 0 }
  0xbb   : > { %v1026_v11 = vpop.permute.xlu0 %1025  ;;  %v1028_v16 = vpop.permute.xlu1 %1027 }
  0xbc   : > { %v1031_v14 = vsel %vm1029_vm9, %v1024_v10, %v1026_v11  ;;  %v1032_v18 = vsel %vm1029_vm9, %v1026_v11, %v1028_v16 }
  0xbd   : > { %v1043_v23 = vsel %vm285_vm2, %v1032_v18, 0 }
  0xbf   : > { %v1132_v15 = vpop.permute.xlu0 %1131  ;;  %v1134_v20 = vpop.permute.xlu1 %1133 }
  0xc0   : > { %v1140_v26 = vsel %vm1139_vm10, %v1132_v15, %v1134_v20 }
  0xc1   : > { %1444 = vmatmul.mubr.msk.bf16.vlgmr.msra.gmra.mrb[0].mxu0 %vm281_vm3, %v1442_v61  ;;  %1513 = vmatmul.mubr.msk.bf16.vlgmr.msra.gmra.mrb[0].mxu1 %vm281_vm3, %v1442_v61  ;;  %v1147_v29 = vsel %vm285_vm2, %v1140_v26, 0 }
  0xc2   : > { %826 = vmatpush1.bf16.msra.mxu0 %v817_v2  ;;  %1517 = vmatpush3.bf16.msra.mxu1 %v823_v3 }
  0xc3   : > { %857 = vmatprep.mubr.bf16.mxu0 %v1667_v1  ;;  %1518 = vmatprep.mubr.msk.bf16.mxu1 %vm1668_vm0, %v1666_v0  ;;  %v1136_v21 = vpop.permute.xlu0 %1135  ;;  %v1138_v25 = vpop.permute.xlu1 %1137 }
  0xc4   : > { %1451 = vmatprep.subr.msk.bf16.mxu0 %vm285_vm2, %v921_v4  ;;  %1522 = vmatprep.subr.bf16.mxu1 %v1666_v0  ;;  %v1141_v24 = vsel %vm1139_vm10, %v1134_v20, %v1136_v21  ;;  %v1142_v27 = vsel %vm1139_vm10, %v1136_v21, %v1138_v25 }
  0xc5   : > { %v1153_v30 = vsel %vm285_vm2, %v1142_v27, 0 }
  0xcd   : > { %1448 = vmatmul.mubr.msk.bf16.vlgmr.msra.gmra.mrb[0].mxu0 %vm281_vm3, %v1446_v9  ;;  %1519 = vmatmul.mubr.msk.bf16.vlgmr.msra.gmra.mrb[0].mxu1 %vm281_vm3, %v1446_v9 }
  0xce   : > { %936 = vmatpush1.bf16.msra.mxu0 %v927_v12  ;;  %1523 = vmatpush3.bf16.msra.mxu1 %v933_v13 }
  0xcf   : > { %967 = vmatprep.mubr.bf16.mxu0 %v1667_v1  ;;  %1524 = vmatprep.mubr.msk.bf16.mxu1 %vm1668_vm0, %v1666_v0 }
  0xd0   : > { %1455 = vmatprep.subr.msk.bf16.mxu0 %vm285_vm2, %v1031_v14  ;;  %1528 = vmatprep.subr.bf16.mxu1 %v1666_v0 }
  0xd9   : > { %1452 = vmatmul.mubr.msk.bf16.vlgmr.msra.gmra.mrb[0].mxu0 %vm281_vm3, %v1450_v19  ;;  %1525 = vmatmul.mubr.msk.bf16.vlgmr.msra.gmra.mrb[0].mxu1 %vm281_vm3, %v1450_v19 }
  0xda   : > { %1046 = vmatpush1.bf16.msra.mxu0 %v1037_v22  ;;  %1529 = vmatpush3.bf16.msra.mxu1 %v1043_v23 }
  0xdb   : > { %1077 = vmatprep.mubr.bf16.mxu0 %v1667_v1  ;;  %1530 = vmatprep.mubr.msk.bf16.mxu1 %vm1668_vm0, %v1666_v0 }
  0xdc   : > { %1459 = vmatprep.subr.msk.bf16.mxu0 %vm285_vm2, %v1141_v24  ;;  %1534 = vmatprep.subr.bf16.mxu1 %v1666_v0 }
  0xe5   : > { %1456 = vmatmul.mubr.msk.bf16.vlgmr.msra.gmra.mrb[0].mxu0 %vm281_vm3, %v1454_v28  ;;  %1531 = vmatmul.mubr.msk.bf16.vlgmr.msra.gmra.mrb[0].mxu1 %vm281_vm3, %v1454_v28 }
  0xe6   : > { %1156 = vmatpush1.bf16.msra.mxu0 %v1147_v29  ;;  %1535 = vmatpush3.bf16.msra.mxu1 %v1153_v30 }
  0xe7   : > { %1187 = vmatprep.mubr.bf16.mxu0 %v1667_v1  ;;  %1536 = vmatprep.mubr.msk.bf16.mxu1 %vm1668_vm0, %v1666_v0  ;;  %v1250_v1 = vsub.s32 1, %v1245_v33 }
  0xe9   : > { %v1251_v0 = vrot.slane %v1242_v35, %v1250_v1 }
  0xf1   : > { %1460 = vmatmul.mubr.msk.bf16.vlgmr.msra.gmra.mrb[0].mxu0 %vm281_vm3, %v1458_v31  ;;  %1537 = vmatmul.mubr.msk.bf16.vlgmr.msra.gmra.mrb[0].mxu1 %vm281_vm3, %v1458_v31 }
 0x1c4   : > { %v1189_v39 = vpop.f32.mrb[0].mxu0  ;;  %v1230_v40 = vpop.f32.mrb[0].mxu1 }
 0x1c5   : > { %1239 = vst [vmem:[%s243_s8] sm:$0xff] %v1189_v39  ;;  %v1259_v41 = vmul.f32 %v1247_v37, %v1189_v39  ;;  %1241 = vst [vmem:[%s243_s8 + $0x10] sm:$0xff] %v1230_v40  ;;  %v1191_v42 = vpop.f32.mrb[1].mxu0  ;;  %v1538_v43 = vpop.f32.mrb[1].mxu1  ;;  %v1261_v47 = vmul.f32 %v1255_v38, %v1230_v40 }
 0x1c6   : > { %1240 = vst [vmem:[%s243_s8 + $0x8] sm:$0xff] %v1191_v42  ;;  %v1260_v44 = vmul.f32 %v1251_v0, %v1191_v42  ;;  %v1193_v45 = vpop.f32.mrb[2].mxu0  ;;  %v1233_v46 = vpop.f32.mrb[2].mxu1 }
 0x1c7   : > { %v1266_v48 = vmul.f32 %v1259_v41, %v1189_v39  ;;  %v1194_v49 = vpop.f32.mrb[3].mxu0  ;;  %v1539_v50 = vpop.f32.mrb[3].mxu1  ;;  %v1268_v54 = vmul.f32 %v1261_v47, %v1230_v40 }
 0x1c8   : > { %v1267_v51 = vmul.f32 %v1260_v44, %v1191_v42  ;;  %v1262_v52 = vadd.f32 %v1260_v44, %v1259_v41 }
 0x1ca   : > { %v1263_v53 = vadd.f32 %v1262_v52, %v1261_v47  ;;  %v1269_v55 = vadd.f32 %v1267_v51, %v1266_v48 }
 0x1cc   : > { %1264 = vadd.xlane.f32.xlu0 %v1263_v53  ;;  %v1270_v56 = vadd.f32 %v1269_v55, %v1268_v54 }
 0x1ce   : > { %1271 = vadd.xlane.f32.xlu1 %v1270_v56 }
 0x256   : > { %1278 = sbr.rel (%p1462_p5) target bundleno = 606 (0x25e), region = 36 }
 0x259   : > { %v1265_v57 = vpop.xlane.xlu0 %1264 }
 0x25b   : > { %v1272_v58 = vpop.xlane.xlu1 %1271 }
 0x25c   : > { %v1274_v59 = vsel %vm1273_vm11, %v1265_v57, %v1272_v58 }
 0x25d   : > { %1280 = vst.msk [vmem:[%s1909_s4] sm:$0xff] %vm1279_vm12, %v1274_v59 }
 0x25e PF: > { %p1463_p6 = scmp.eq.s32.totalorder %s1656_s15, 0 }
 0x25f   : > { %vm1287_vm13 = vcmask (!%p1463_p6), 15360  }
 0x260   : > { %1284 = sbr.rel (%p1463_p6) target bundleno = 616 (0x268), region = 40 }
 0x264   : > { %v1285_v60 = vld [vmem:[%s1909_s4] sm:$0xff] (!%p1463_p6) }
 0x265   : > { %v1286_v61 = vadd.f32 (!%p1463_p6), %v1285_v60, %v1274_v59 }
 0x267   : > { %1288 = vst.msk [vmem:[%s1909_s4] sm:$0xff] %vm1287_vm13, %v1286_v61 }
 0x268 PF: > { %s15_s17 = sadd.s32 1, %s1664_s17   ;;  %s1910_s15 = smov %s1660_s16 }
 0x269   : > { %p12_p7 = scmp.ge.s32.totalorder %s15_s17, 4   ;;  %s1911_s16 = smov %s1913_s18 }
 0x26b   :  { %14 = sbr.rel (!%p12_p7) target bundleno = 2 (0x2), region = 93 }

</bundles_post_ra>
